<compile_context>
chip_gen: v7x
topology: tpu7x:2x2x1
jax: 0.10.0
libtpu: 0.0.40
codegen_flags: <defaults>
</compile_context>

<pallas_src>
import jax
import jax.numpy as jnp
from jax import lax
from jax.experimental import pallas as pl
from jax.experimental.pallas import tpu as pltpu


def _make_conv_kernel(KH, Ho):
    """KH plain GEMMs on lane-dense rows; result is already output-layout."""

    def conv_kernel(x_ref, w_ref, b_ref, o_ref):
        # x_ref: (Hp, Wp*Cin)           whole padded image, lane-dense rows
        # w_ref: (KH, Wp*Cin, Wo*Cout)  resident Toeplitz-folded weights
        # b_ref: (1, Wo*Cout)           resident bias, pre-tiled along x
        # o_ref: (Ho, Wo*Cout)          lane-dense output rows
        acc = jnp.dot(x_ref[0:Ho, :], w_ref[0],
                      preferred_element_type=jnp.float32)
        for kh in range(1, KH):
            acc = acc + jnp.dot(x_ref[kh:kh + Ho, :], w_ref[kh],
                                preferred_element_type=jnp.float32)
        acc = acc + b_ref[...]                                   # fused bias
        o_ref[...] = jnp.maximum(acc, 0.0).astype(o_ref.dtype)   # fused ReLU

    return conv_kernel


def _toeplitz_weights(weight_oihw, Wp, Wo):
    """Fold (kw, cin) taps into per-kh GEMM weights.

    T[kh, w*Cin + ci, x*Cout + co] = weight[co, ci, kh, w - x] if 0 <= w-x < KW
                                     else 0
    so that  row(y+kh) @ T[kh]  sums the kw/ci taps for every (x, co) at once.
    One-time XLA cost in the wrapper; resident in VMEM during the kernel.
    """
    Cout, Cin, KH, KW = weight_oihw.shape
    w_khwc = jnp.transpose(weight_oihw, (2, 3, 1, 0))            # (KH, KW, Cin, Cout)
    w_idx = jnp.arange(Wp)
    x_idx = jnp.arange(Wo)
    kw_rel = w_idx[:, None] - x_idx[None, :]                     # (Wp, Wo)
    valid = (kw_rel >= 0) & (kw_rel < KW)
    kw_cl = jnp.clip(kw_rel, 0, KW - 1)
    T = w_khwc[:, kw_cl]                                         # (KH, Wp, Wo, Cin, Cout)
    T = jnp.where(valid[None, :, :, None, None], T, 0.0)
    T = jnp.transpose(T, (0, 1, 3, 2, 4))                        # (KH, Wp, Cin, Wo, Cout)
    return T.reshape(KH, Wp * Cin, Wo * Cout)


def conv2d_layer_forward(x_nchw, weight_oihw, bias, *, stride=1, padding=1):
    """Forward pass of Conv2DLayer (norm=False): relu(conv2d(x) + b). NCHW in/out."""
    assert stride == 1, "kernel written for the module default stride=1"
    N, Cin, H, W = x_nchw.shape
    Cout, Cin_w, KH, KW = weight_oihw.shape
    assert Cin == Cin_w

    Ho = H + 2 * padding - KH + 1
    Wo = W + 2 * padding - KW + 1
    Hp = H + 2 * padding
    Wp = W + 2 * padding
    assert Ho >= 1 and Wo >= 1

    # ---- one-time XLA glue: layout, spatial zero-pad, weight/bias folding ----
    x_nhwc = jnp.transpose(x_nchw, (0, 2, 3, 1))                            # (N,H,W,Cin)
    x_pad = jnp.pad(x_nhwc, ((0, 0), (padding, padding), (padding, padding), (0, 0)))
    x_rows = x_pad.reshape(N, Hp, Wp * Cin)        # lane-dense rows, read once from HBM

    T = _toeplitz_weights(weight_oihw, Wp, Wo).astype(x_nchw.dtype)
    b_row = jnp.tile(bias, Wo).reshape(1, Wo * Cout).astype(jnp.float32)

    # ---- VMEM budget (double-buffered in/out blocks + resident weights) ----
    itemsize = jnp.dtype(x_nchw.dtype).itemsize
    vmem_need = itemsize * (2 * Hp * (Wp * Cin)              # input block x2
                            + 2 * Ho * (Wo * Cout)           # output block x2
                            + KH * (Wp * Cin) * (Wo * Cout)  # resident Toeplitz rhs
                            + (Wo * Cout))                   # bias row
    # TODO(synk): large-channel / large-W shapes need the tiled tap-GEMM path.
    assert vmem_need <= 40 * (1 << 20), (
        "shape too large for the whole-image Toeplitz path; needs the tiled "
        f"Cin-on-lanes conv path (vmem_need={vmem_need} bytes)")
    vmem_limit = int(min(max(vmem_need + (8 << 20), 32 << 20), 48 << 20))

    kernel = _make_conv_kernel(KH, Ho)

    out_rows = pl.pallas_call(
        kernel,
        out_shape=jax.ShapeDtypeStruct((N, Ho, Wo * Cout), x_nchw.dtype),
        grid_spec=pltpu.PrefetchScalarGridSpec(
            num_scalar_prefetch=0,
            grid=(N,),
            in_specs=[
                pl.BlockSpec((None, Hp, Wp * Cin), lambda n: (n, 0, 0)),
                pl.BlockSpec((KH, Wp * Cin, Wo * Cout), lambda n: (0, 0, 0)),
                pl.BlockSpec((1, Wo * Cout), lambda n: (0, 0)),
            ],
            out_specs=pl.BlockSpec((None, Ho, Wo * Cout), lambda n: (n, 0, 0)),
        ),
        compiler_params=pltpu.CompilerParams(
            dimension_semantics=("parallel",),
            vmem_limit_bytes=vmem_limit,
        ),
    )(x_rows, T, b_row)

    out_nhwc = out_rows.reshape(N, Ho, Wo, Cout)
    return jnp.transpose(out_nhwc, (0, 3, 1, 2))                            # back to NCHW


if __name__ == "__main__":
    # Deterministic synthetic parameters (stand-in for weight_init in the module).
    key = jax.random.PRNGKey(0)
    k_x, k_w, k_b = jax.random.split(key, 3)

    N, Cin, H, W = 2, 4, 16, 16
    Cout, K = 8, 3

    x = jax.random.normal(k_x, (N, Cin, H, W), dtype=jnp.float32)
    weight = jax.random.normal(k_w, (Cout, Cin, K, K), dtype=jnp.float32) * 0.1
    bias = jax.random.normal(k_b, (Cout,), dtype=jnp.float32) * 0.1

    out = conv2d_layer_forward(x, weight, bias)
    out = jax.block_until_ready(out)

    # Cross-check against XLA's conv (pure JAX reference of the same math).
    ref = lax.conv_general_dilated(
        x, weight, window_strides=(1, 1), padding=((1, 1), (1, 1)),
        dimension_numbers=("NCHW", "OIHW", "NCHW"))
    ref = jnp.maximum(ref + bias[None, :, None, None], 0.0)
    assert out.shape == (N, Cout, H, W)
    assert jnp.allclose(out, ref, atol=1e-4, rtol=1e-4)

    print("KERNEL_OK")
</pallas_src>

<mosaic_0001>
module attributes {stable_mosaic.version = 11 : i64} {
  func.func @conv_kernel(%arg0: i32, %arg1: memref<1x18x72xf32, #tpu.memory_space<vmem>>, %arg2: memref<3x72x128xf32, #tpu.memory_space<vmem>>, %arg3: memref<1x128xf32, #tpu.memory_space<vmem>>, %arg4: memref<1x16x128xf32, #tpu.memory_space<vmem>>) attributes {dimension_semantics = [#tpu.dimension_semantics<parallel>], iteration_bounds = array<i64: 2>, scalar_prefetch = 0 : i64, scratch_operands = 0 : i64, tpu.core_type = #tpu.core_type<tc>, window_params = [{transform_indices = @transform_0, window_bounds = array<i64: 1, 18, 72>}, {pipeline_mode = #tpu.pipeline_mode<synchronous>, transform_indices = @transform_1, window_bounds = array<i64: 3, 72, 128>}, {pipeline_mode = #tpu.pipeline_mode<synchronous>, transform_indices = @transform_2, window_bounds = array<i64: 1, 128>}, {transform_indices = @transform_3, window_bounds = array<i64: 1, 16, 128>}]} {
    %c0 = arith.constant 0 : index
    %c0_0 = arith.constant 0 : index
    %c0_1 = arith.constant 0 : index
    %0 = vector.load %arg1[%c0, %c0_0, %c0_1] : memref<1x18x72xf32, #tpu.memory_space<vmem>>, vector<1x16x72xf32>
    %1 = vector.shape_cast %0 : vector<1x16x72xf32> to vector<16x72xf32>
    %c0_2 = arith.constant 0 : index
    %c0_3 = arith.constant 0 : index
    %c0_4 = arith.constant 0 : index
    %2 = vector.load %arg2[%c0_2, %c0_3, %c0_4] : memref<3x72x128xf32, #tpu.memory_space<vmem>>, vector<1x72x128xf32>
    %3 = vector.shape_cast %2 : vector<1x72x128xf32> to vector<72x128xf32>
    %cst = arith.constant dense<0.000000e+00> : vector<16x128xf32>
    %4 = tpu.matmul %1, %3, %cst {dimension_numbers = #tpu.dot_dimension_numbers<[1], [0], [0], [1], [0, 0, 1, 1], [], []>} : vector<16x72xf32>, vector<72x128xf32>, vector<16x128xf32> -> vector<16x128xf32>
    %c0_5 = arith.constant 0 : index
    %c1 = arith.constant 1 : index
    %c0_6 = arith.constant 0 : index
    %5 = vector.load %arg1[%c0_5, %c1, %c0_6] : memref<1x18x72xf32, #tpu.memory_space<vmem>>, vector<1x16x72xf32>
    %6 = vector.shape_cast %5 : vector<1x16x72xf32> to vector<16x72xf32>
    %c1_7 = arith.constant 1 : index
    %c0_8 = arith.constant 0 : index
    %c0_9 = arith.constant 0 : index
    %7 = vector.load %arg2[%c1_7, %c0_8, %c0_9] : memref<3x72x128xf32, #tpu.memory_space<vmem>>, vector<1x72x128xf32>
    %8 = vector.shape_cast %7 : vector<1x72x128xf32> to vector<72x128xf32>
    %cst_10 = arith.constant dense<0.000000e+00> : vector<16x128xf32>
    %9 = tpu.matmul %6, %8, %cst_10 {dimension_numbers = #tpu.dot_dimension_numbers<[1], [0], [0], [1], [0, 0, 1, 1], [], []>} : vector<16x72xf32>, vector<72x128xf32>, vector<16x128xf32> -> vector<16x128xf32>
    %10 = arith.addf %4, %9 : vector<16x128xf32>
    %c0_11 = arith.constant 0 : index
    %c2 = arith.constant 2 : index
    %c0_12 = arith.constant 0 : index
    %11 = vector.load %arg1[%c0_11, %c2, %c0_12] : memref<1x18x72xf32, #tpu.memory_space<vmem>>, vector<1x16x72xf32>
    %12 = vector.shape_cast %11 : vector<1x16x72xf32> to vector<16x72xf32>
    %c2_13 = arith.constant 2 : index
    %c0_14 = arith.constant 0 : index
    %c0_15 = arith.constant 0 : index
    %13 = vector.load %arg2[%c2_13, %c0_14, %c0_15] : memref<3x72x128xf32, #tpu.memory_space<vmem>>, vector<1x72x128xf32>
    %14 = vector.shape_cast %13 : vector<1x72x128xf32> to vector<72x128xf32>
    %cst_16 = arith.constant dense<0.000000e+00> : vector<16x128xf32>
    %15 = tpu.matmul %12, %14, %cst_16 {dimension_numbers = #tpu.dot_dimension_numbers<[1], [0], [0], [1], [0, 0, 1, 1], [], []>} : vector<16x72xf32>, vector<72x128xf32>, vector<16x128xf32> -> vector<16x128xf32>
    %16 = arith.addf %10, %15 : vector<16x128xf32>
    %c0_17 = arith.constant 0 : index
    %c0_18 = arith.constant 0 : index
    %17 = vector.load %arg3[%c0_17, %c0_18] : memref<1x128xf32, #tpu.memory_space<vmem>>, vector<1x128xf32>
    %18 = vector.broadcast %17 : vector<1x128xf32> to vector<16x128xf32>
    %19 = arith.addf %16, %18 : vector<16x128xf32>
    %cst_19 = arith.constant 0.000000e+00 : f32
    %20 = vector.broadcast %cst_19 : f32 to vector<16x128xf32>
    %21 = arith.maximumf %19, %20 : vector<16x128xf32>
    %c0_20 = arith.constant 0 : index
    %c0_21 = arith.constant 0 : index
    %c0_22 = arith.constant 0 : index
    %22 = vector.load %arg4[%c0_20, %c0_21, %c0_22] : memref<1x16x128xf32, #tpu.memory_space<vmem>>, vector<1x16x128xf32>
    %23 = vector.shape_cast %22 : vector<1x16x128xf32> to vector<16x128xf32>
    %24 = vector.shape_cast %21 : vector<16x128xf32> to vector<1x16x128xf32>
    tpu.vector_store %arg4[%c0_20, %c0_21, %c0_22], %24 {strides = array<i32>} : memref<1x16x128xf32, #tpu.memory_space<vmem>>, vector<1x16x128xf32>,
    return
  }
  func.func @transform_0(%arg0: i32) -> (i32, i32, i32) {
    %c0_i32 = arith.constant 0 : i32
    %c0_i32_0 = arith.constant 0 : i32
    %c0_i32_1 = arith.constant 0 : i32
    return %arg0, %c0_i32, %c0_i32_0 : i32, i32, i32
  }
  func.func @transform_1(%arg0: i32) -> (i32, i32, i32) {
    %c0_i32 = arith.constant 0 : i32
    %c0_i32_0 = arith.constant 0 : i32
    %c0_i32_1 = arith.constant 0 : i32
    %c0_i32_2 = arith.constant 0 : i32
    return %c0_i32, %c0_i32_0, %c0_i32_1 : i32, i32, i32
  }
  func.func @transform_2(%arg0: i32) -> (i32, i32) {
    %c0_i32 = arith.constant 0 : i32
    %c0_i32_0 = arith.constant 0 : i32
    %c0_i32_1 = arith.constant 0 : i32
    return %c0_i32, %c0_i32_0 : i32, i32
  }
  func.func @transform_3(%arg0: i32) -> (i32, i32, i32) {
    %c0_i32 = arith.constant 0 : i32
    %c0_i32_0 = arith.constant 0 : i32
    %c0_i32_1 = arith.constant 0 : i32
    return %arg0, %c0_i32, %c0_i32_0 : i32, i32, i32
  }
}

</mosaic_0001>

<bundles_post_ra>
// kernel: tpu_custom_call.1
= control target key start
LH: loop header
LB: loop body
LE: loop exit
PB: predicated region body
PF: predicated region fallthrough
CT: control target
= control target key end

     0   :  { %8 = vsyncpa [#allocation3], 0  ;;  %s1067_s0 = inlined_call_operand.vmem [shape: f32[2,18,72], index: 0, kind: input, shape index: {}]   ;;  %s1068_s1 = inlined_call_operand.hbm [shape: f32[3,72,128], index: 1, kind: input, shape index: {}]   ;;  %s1069_s2 = inlined_call_operand.vmem [shape: f32[1,128], index: 2, kind: input, shape index: {}]   ;;  %s1070_s3 = inlined_call_operand.hbm [shape: f32[2,16,128], index: 3, kind: output, shape index: {}]  }
   0x1   :  { %9 = vsyncpa [#allocation4], 0 }
   0x2   :  { %11 = vsyncpa [#allocation4 + $0x1], 0  ;;  %s912_s12 = smov 0   ;;  %s914_s13 = smov 0  }
   0x3   :  { %s916_s14 = smov 0   ;;  %s918_s15 = smov 0  }
   0x4 LB: > { %s933_s16 = sadd.s32 4294967295, %s884_s15   ;;  %s566_s17 = sadd.s32 4294967294, %s884_s15   ;;  %s884_s15 = sphi %s918_s15, %s1086_s15   ;;  %s880_s14 = sphi %s916_s14, %s1085_s14   ;;  %s876_s13 = sphi %s914_s13, %s1084_s13   ;;  %s872_s12 = sphi %s912_s12, %s1083_s12  }
   0x5   : > { %s937_s18 = sadd.s32 1, %s884_s15   ;;  %s92_s19 = sadd.s32 1, %s880_s14 }
   0x6   : > { %s89_s20 = ssub.s32 %s884_s15, %s937_s18  ;;  %p102_p0 = scmp.ne.s32.totalorder %s880_s14, %s876_s13 }
   0x7   : > { %p90_p1 = scmp.eq.s32.totalorder %s89_s20, 0  ;;  %p103_p2 = scmp.eq.s32.totalorder %s933_s16, 1 }
   0x8   : > { %p108_p3 = scmp.ne.s32.totalorder %s876_s13, %s872_s12  ;;  %p109_p4 = scmp.eq.s32.totalorder %s566_s17, 1 }
   0x9   : > { %s948_s21 = scalar_select %p90_p1, %s880_s14, %s92_s19  }
   0xa   : > { %p950_p5 = por %p103_p2, %p102_p0  ;;  %p954_p6 = por %p109_p4, %p108_p3 }
   0xb   : > { %p567_p7 = scmp.ge.s32.totalorder %s884_s15, 1  ;;  %p116_p8 = scmp.lt.s32.totalorder %s884_s15, 3 }
   0xc   : > { %s1074_s22 = scalar_select %p950_p5, 1, 0 }
   0xd   : > { %s1075_s23 = scalar_select %p954_p6, 1, 0 }
   0xe   : > { %p1071_p9 = scmp.eq.s32.totalorder %s933_s16, 0  ;;  %p961_p10 = pnand %p567_p7, %p116_p8 }
   0xf   : > { %s886_s25 = smov [#allocation2]   ;;  %s790_s30 = scalar_lea.hbm %s1068_s1, 3456 }
  0x10   : > { %s1076_s24 = scalar_select %p961_p10, 1, 0 }
  0x11   : > { %s128_s26 = sshll.u32 %s886_s25, 4  ;;  %p742_p11 = pneg %p961_p10  ;;  %s129_s26 = int_to_ptr.vmem [resolvable:$true] %s128_s26 }
  0x12   : > { %p791_p13 = scmp.ne.s32.totalorder %s1068_s1, %s790_s30  ;;  %p797_p3 = scmp.lt.u32.totalorder %s790_s30, %s1068_s1 }
  0x13   : > { %p969_p12 = pnand %p1071_p9, %p742_p11 }
  0x15   : > { %p792_p0 = pneg %p969_p12 }
  0x17   : > { %p793_p1 = pnand %p792_p0, %p791_p13 }
  0x19   : > { %p794_p2 = pneg %p793_p1 }
  0x1b   : > { %p799_p4 = pnand %p797_p3, %p794_p2 }
  0x1d   : > { %802 = shalt.err (!%p799_p4)
}
  0x1e   : > { %s803_s8 = scalar_lea.vmem %s129_s26, 3456  ;;  %p811_p9 = scmp.lt.s32.totalorder %s129_s26, %s129_s26 }
  0x1f   : > { %p804_p7 = scmp.ne.s32.totalorder %s129_s26, %s803_s8  ;;  %p812_p6 = scmp.lt.s32.totalorder %s803_s8, %s803_s8 }
  0x21   : > { %p806_p8 = pnand %p804_p7, %p792_p0  ;;  %p813_p5 = por %p812_p6, %p811_p9 }
  0x23   : > { %p807_p11 = pneg %p806_p8 }
  0x25   : > { %p814_p10 = pnand %p813_p5, %p807_p11 }
  0x27   : > { %817 = shalt.err (!%p814_p10)
}
  0x28   : > { %s887_s9 = smov 128   ;;  %s888_s10 = smov 8  }
  0x29   : > { %745 = dma.hbm_to_vmem [thread:$0]  (!%p969_p12), %s1068_s1, 3456, %s129_s26, [#allocation3], %s887_s9, %s887_s9, %s888_s10  }
  0x2a   : > { %p1078_p13 = scmp.ne.s32.totalorder %s1076_s24, 0 }
  0x2b   : > { %p1079_p1 = scmp.eq.s32.totalorder (!%p1078_p13), %s933_s16, 0 }
  0x2c   : > { %155 = sbr.rel (%p1078_p13) target bundleno = 325 (0x145), region = 32 }
  0x33   : > { %863 = dma.done.wait (%p1079_p1), [#allocation3], 3456   ;;  %p1080_p0 = pmov %p1079_p1 }
  0x34   : > { %p179_p5 = scmp.lt.s32.totalorder %s933_s16, 1  ;;  %v186_v0 = vld [vmem:[#allocation2] sm:$0xff]  ;;  %v187_v1 = vld [vmem:[#allocation2 + $0x8] sm:$0xff]  ;;  %v188_v2 = vld [vmem:[#allocation2 + $0x10] sm:$0xff]  ;;  %vm207_vm0 = vcmask 588800   ;;  %s176_s24 = sand.u32 1, %s876_s13  }
  0x35   : > { %865 = vsyncadd (%p1080_p0), [#allocation3], 4294963840  ;;  %v699_v3 = vpack.c.bf16 %v187_v1, %v186_v0  ;;  %v189_v4 = vld [vmem:[#allocation2 + $0x18] sm:$0xff]  ;;  %v190_v6 = vld [vmem:[#allocation2 + $0x20] sm:$0xff]  ;;  %s572_s28 = sshll.u32 %s176_s24, 4  ;;  %s586_s6 = sshll.u32 %s933_s16, 8 }
  0x36   : > { %s180_s19 = scalar_select %p179_p5, %s933_s16, 1  ;;  %v703_v5 = vpack.c.bf16 %v189_v4, %v188_v2  ;;  %v191_v7 = vld [vmem:[#allocation2 + $0x28] sm:$0xff]  ;;  %v199_v9 = vld [vmem:[#allocation2 + $0x50] sm:$0xff]  ;;  %v200_v14 = vld [vmem:[#allocation2 + $0x58] sm:$0xff] }
  0x37   : > { %700 = vmatprep.subr.bf16.mxu0 %v699_v3  ;;  %v198_v8 = vld [vmem:[#allocation2 + $0x48] sm:$0xff]  ;;  %v707_v12 = vpack.c.bf16 %v191_v7, %v190_v6  ;;  %v192_v13 = vld [vmem:[#allocation2 + $0x30] sm:$0xff]  ;;  %v201_v15 = vld [vmem:[#allocation2 + $0x60] sm:$0xff]  ;;  %s178_s4 = scalar_lea.vmem [#allocation5], %s572_s28  ;;  %s1024_s9 = scalar_lea.hbm %s1070_s3, %s586_s6 }
  0x38   : > { %s735_s20 = smul.u32 24, %s180_s19  ;;  %702 = vmatpush3.bf16.msra.mxu0 %v699_v3  ;;  %v683_v11 = vpack.c.bf16 %v199_v9, %v198_v8  ;;  %v193_v16 = vld [vmem:[#allocation2 + $0x38] sm:$0xff]  ;;  %v687_v17 = vpack.c.bf16 %v201_v15, %v200_v14  ;;  %v202_v18 = vld [vmem:[#allocation2 + $0x68] sm:$0xff]  ;;  %v203_v19 = vld [vmem:[#allocation2 + $0x70] sm:$0xff]  ;;  %s492_s5 = sshll.u32 %s178_s4, 4  ;;  %s1019_s5 = int_to_ptr.vmem [resolvable:$true] %s492_s5 }
  0x39   : > { %704 = vmatprep.subr.bf16.mxu0 %v703_v5  ;;  %v691_v20 = vpack.c.bf16 %v203_v19, %v202_v18  ;;  %v711_v21 = vpack.c.bf16 %v193_v16, %v192_v13  ;;  %v204_v22 = vld [vmem:[#allocation2 + $0x78] sm:$0xff]  ;;  %v205_v23 = vld [vmem:[#allocation2 + $0x80] sm:$0xff]  ;;  %v373_v27 = vld [vmem:[#allocation2 + $0x90] sm:$0xff]  ;;  %s1026_s10 = scalar_lea.sflag [#allocation4], %s176_s24  ;;  %s818_s11 = scalar_lea.vmem %s1019_s5, 256 }
  0x3a   : > { %s1000_s26 = scalar_lea.vmem %s1067_s0, %s735_s20  ;;  %684 = vmatprep.subr.bf16.mxu1 %v683_v11  ;;  %v695_v25 = vpack.c.bf16 %v205_v23, %v204_v22  ;;  %v194_v26 = vld [vmem:[#allocation2 + $0x40] sm:$0xff]  ;;  %v374_v28 = vld [vmem:[#allocation2 + $0x98] sm:$0xff]  ;;  %v376_v30 = vld [vmem:[#allocation2 + $0xa8] sm:$0xff]  ;;  %p819_p6 = scmp.ne.s32.totalorder %s1019_s5, %s818_s11 }
  0x3b   : > { %v184_v10 = vld [vmem:[%s1000_s26] sm:$0xff]  ;;  %686 = vmatpush3.bf16.msra.mxu1 %v683_v11  ;;  %v375_v29 = vld [vmem:[#allocation2 + $0xa0] sm:$0xff]  ;;  %v715_v31 = vpack.c.bf16 %v374_v28, %v373_v27  ;;  %v206_v32 = vld [vmem:[#allocation2 + $0x88] sm:$0xff]  ;;  %p1081_p9 = scmp.ne.s32.totalorder %s1074_s22, 0  ;;  %s889_s16 = smov [#allocation5]  }
  0x3c   : > { %659 = vmatprep.mubr.msk.f32.mxu0 %vm207_vm0, %v184_v10  ;;  %706 = vmatpush3.bf16.msra.mxu0 %v703_v5  ;;  %v195_v24 = vld [vmem:[%s1000_s26 + $0x1] sm:$0xff]  ;;  %v719_v34 = vpack.c.bf16 %v376_v30, %v375_v29  ;;  %v196_v38 = vld [vmem:[%s1000_s26 + $0x9] sm:$0xff]  ;;  %v380_v41 = vld [vmem:[#allocation2 + $0xc8] sm:$0xff]  ;;  %s822_s17 = sshll.u32 %s889_s16, 4  ;;  %s823_s17 = int_to_ptr.vmem [resolvable:$false] %s822_s17 }
  0x3d   : > { %688 = vmatprep.subr.bf16.mxu1 %v687_v17  ;;  %708 = vmatprep.subr.bf16.mxu0 %v707_v12  ;;  %v185_v33 = vld [vmem:[%s1000_s26 + $0x8] sm:$0xff]  ;;  %v377_v36 = vld [vmem:[#allocation2 + $0xb0] sm:$0xff]  ;;  %v379_v40 = vld [vmem:[#allocation2 + $0xc0] sm:$0xff]  ;;  %p820_p10 = pnand %p819_p6, %p1081_p9  ;;  %s824_s19 = scalar_lea.vmem %s823_s17, 512 }
  0x3e   : > { %638 = vmatprep.mubr.msk.f32.mxu1 %vm207_vm0, %v195_v24  ;;  %v370_v35 = vld [vmem:[%s1000_s26 + $0x2] sm:$0xff]  ;;  %v727_v42 = vpack.c.bf16 %v380_v41, %v379_v40  ;;  %v371_v44 = vld [vmem:[%s1000_s26 + $0xa] sm:$0xff]  ;;  %v580_v48 = vld [vmem:[%s1069_s2] ss:$0 sm:$0xff]  ;;  %p825_p2 = scmp.lt.s32.totalorder %s1019_s5, %s823_s17  ;;  %p826_p3 = scmp.lt.s32.totalorder %s824_s19, %s818_s11 }
  0x3f   : > { %690 = vmatpush3.bf16.msra.mxu1 %v687_v17  ;;  %v378_v37 = vld [vmem:[#allocation2 + $0xb8] sm:$0xff]  ;;  %v381_v43 = vld [vmem:[#allocation2 + $0xd0] sm:$0xff]  ;;  %p821_p12 = pneg %p820_p10 }
  0x40   : > { %710 = vmatpush3.bf16.msra.mxu0 %v707_v12  ;;  %692 = vmatprep.subr.bf16.mxu1 %v691_v20  ;;  %v723_v39 = vpack.c.bf16 %v378_v37, %v377_v36  ;;  %p827_p4 = por %p826_p3, %p825_p2 }
  0x41   : > { %712 = vmatprep.subr.bf16.mxu0 %v711_v21 }
  0x42   : > { %p828_p7 = pnand %p827_p4, %p821_p12 }
  0x43   : > { %694 = vmatpush3.bf16.msra.mxu1 %v691_v20 }
  0x44   : > { %714 = vmatpush3.bf16.msra.mxu0 %v711_v21  ;;  %696 = vmatprep.subr.bf16.mxu1 %v695_v25 }
  0x45   : > { %657 = vmatprep.subr.mxu0 %v194_v26 }
  0x47   : > { %698 = vmatpush3.bf16.msra.mxu1 %v695_v25 }
  0x48   : > { %658 = vmatpush3.msra.mxu0 %v194_v26  ;;  %636 = vmatprep.subr.mxu1 %v206_v32 }
  0x49   : > { %716 = vmatprep.subr.bf16.mxu0 %v715_v31  ;;  %660 = vmatmul.mubr.msk.f32.vlgmr.msra.gmra.mrb[0].mxu0 %vm207_vm0, %v185_v33 }
  0x4a   : > { %718 = vmatpush3.bf16.msra.mxu0 %v715_v31  ;;  %680 = vmatprep.mubr.msk.f32.mxu0 %vm207_vm0, %v370_v35 }
  0x4b   : > { %720 = vmatprep.subr.bf16.mxu0 %v719_v34  ;;  %637 = vmatpush3.msra.mxu1 %v206_v32 }
  0x4c   : > { %639 = vmatmul.mubr.msk.f32.vlgmr.msra.gmra.mrb[0].mxu1 %vm207_vm0, %v196_v38 }
  0x4e   : > { %722 = vmatpush3.bf16.msra.mxu0 %v719_v34 }
  0x4f   : > { %724 = vmatprep.subr.bf16.mxu0 %v723_v39 }
  0x52   : > { %726 = vmatpush3.bf16.msra.mxu0 %v723_v39 }
  0x53   : > { %728 = vmatprep.subr.bf16.mxu0 %v727_v42 }
  0x56   : > { %730 = vmatpush3.bf16.msra.mxu0 %v727_v42 }
  0x57   : > { %678 = vmatprep.subr.mxu0 %v381_v43 }
  0x5a   : > { %679 = vmatpush3.msra.mxu0 %v381_v43 }
  0x5b   : > { %681 = vmatmul.mubr.msk.f32.vlgmr.msra.gmra.mrb[0].mxu0 %vm207_vm0, %v371_v44 }
 0x11f   : > { %v640_v45 = vpop.f32.mrb[0].mxu1 }
 0x120   : > { %v280_v46 = vpop.f32.mrb[1].mxu1 }
 0x12e   : > { %v682_v47 = vpop.f32.mrb[0].mxu0 }
 0x12f   : > { %v731_v49 = vadd.f32 %v682_v47, %v640_v45  ;;  %v454_v50 = vpop.f32.mrb[1].mxu0 }
 0x130   : > { %v732_v51 = vadd.f32 %v454_v50, %v280_v46 }
 0x131   : > { %v473_v52 = vadd.f32 %v731_v49, %v580_v48 }
 0x132   : > { %v472_v53 = vadd.f32 %v732_v51, %v580_v48 }
 0x133   : > { %v475_v54 = vmax.f32 %v473_v52, 0.0 }
 0x134   : > { %v474_v55 = vmax.f32 %v472_v53, 0.0 }
 0x135   : > { %477 = vst [vmem:[%s178_s4 + $0x8] sm:$0xff] %v475_v54 }
 0x136   : > { %476 = vst [vmem:[%s178_s4] sm:$0xff] %v474_v55 }
 0x137   : > { %831 = shalt.err (!%p828_p7)
}
 0x138   : > { %s832_s20 = scalar_lea.hbm %s1024_s9, 256  ;;  %s836_s26 = scalar_lea.hbm %s1070_s3, 512 }
 0x139   : > { %p833_p8 = scmp.ne.s32.totalorder %s1024_s9, %s832_s20  ;;  %p837_p1 = scmp.lt.u32.totalorder %s1024_s9, %s1070_s3 }
 0x13a   : > { %p838_p0 = scmp.lt.u32.totalorder %s836_s26, %s832_s20  ;;  %p840_p6 = scmp.lt.u32.totalorder %s832_s20, %s1024_s9 }
 0x13b   : > { %p834_p11 = pnand %p833_p8, %p1081_p9 }
 0x13c   : > { %p839_p5 = por %p838_p0, %p837_p1 }
 0x13d   : > { %p835_p13 = pneg %p834_p11 }
 0x13e   : > { %p841_p10 = por %p840_p6, %p839_p5 }
 0x140   : > { %p842_p12 = pnand %p841_p10, %p835_p13 }
 0x142   : > { %845 = shalt.err (!%p842_p12)
}
 0x143   : > { %s890_s29 = smov 128   ;;  %s891_s30 = smov 8  }
 0x144   : > { %740 = dma.vmem_to_hbm [thread:$0]  (%p1081_p9), %s1019_s5, 256, %s1024_s9, %s1026_s10, %s890_s29, %s890_s29, %s891_s30  }
 0x145 PF: > { %p752_p2 = scmp.ge.s32.totalorder %s884_s15, 2  ;;  %s507_s4 = sand.u32 1, %s872_s12  }
 0x146   : > { %p1082_p3 = scmp.ne.s32.totalorder %s1075_s23, 0  ;;  %s508_s6 = scalar_lea.sflag [#allocation4], %s507_s4 }
 0x148   : > { %p747_p4 = pnand %p752_p2, %p1082_p3 }
 0x14a   : > { %867 = dma.done.wait (!%p747_p4), %s508_s6, 256  }
 0x14b   : > { %869 = vsyncadd (!%p747_p4), %s508_s6, 4294967040  ;;  %p14_p7 = scmp.ge.s32.totalorder %s937_s18, 4   ;;  %s1083_s12 = smov %s876_s13 }
 0x14c   : > { %s1084_s13 = smov %s880_s14  ;;  %s1085_s14 = smov %s948_s21 }
 0x14d   : > { %s1086_s15 = smov %s937_s18  ;;  %16 = sbr.rel (!%p14_p7) target bundleno = 4 (0x4), region = 74 }
 0x154   :  { %513 = vsyncpa [#allocation3], 1 }
 0x155   :  { %515 = vsyncpa [#allocation3 + $0x1], 1 }
 0x156   :  { %516 = vsyncpa [#allocation4], 1 }
 0x157   :  { %518 = vsyncpa [#allocation4 + $0x1], 1 }

</bundles_post_ra>
